<compile_context>
chip_gen: v6e
topology: v6e:2x2x1
jax: 0.10.0
libtpu: 0.0.40
codegen_flags: <defaults>
</compile_context>

<pallas_src>
import functools

import jax
import jax.numpy as jnp
from jax.experimental import pallas as pl
from jax.experimental.pallas import tpu as pltpu


def _round_up(v, m):
    return ((v + m - 1) // m) * m


def _actor_kernel(x_ref, w1_ref, b1_ref, w2_ref, b2_ref, w3_ref, b3_ref,
                  o_ref, *, max_action):
    # Layer 1: Linear (bf16 MXU operands, f32 accumulate) + bias/ReLU in f32.
    x = x_ref[...].astype(jnp.bfloat16)
    h1 = jnp.dot(x, w1_ref[...], preferred_element_type=jnp.float32)
    h1 = jnp.maximum(h1 + b1_ref[...], 0.0)
    # Layer 2.
    h2 = jnp.dot(h1.astype(jnp.bfloat16), w2_ref[...],
                 preferred_element_type=jnp.float32)
    h2 = jnp.maximum(h2 + b2_ref[...], 0.0)
    # Layer 3 + tanh (EUP) + max_action scaling, all f32 elementwise.
    out = jnp.dot(h2.astype(jnp.bfloat16), w3_ref[...],
                  preferred_element_type=jnp.float32)
    out = jnp.tanh(out + b3_ref[...])
    o_ref[...] = (max_action * out).astype(o_ref.dtype)


def actor_forward(x, params, max_action, *, block_b=128):
    """Fused 3-layer MLP actor.  x: (B, state_dim) f32 -> (B, act_dim) f32."""
    w1, b1, w2, b2, w3, b3 = params
    B, S = x.shape
    H = w1.shape[1]
    A = w3.shape[1]

    # Lane-dense output: pad act_dim up to a multiple of 128 (zero columns).
    A_pad = _round_up(A, 128)
    if A_pad != A:
        w3 = jnp.pad(w3, ((0, 0), (0, A_pad - A)))
        b3 = jnp.pad(b3, ((0, 0), (0, A_pad - A)))

    # Batch tile: <= block_b, multiple of 8 (sublane constraint), no bigger
    # than needed for small batches.
    tb = min(block_b, _round_up(B, 8))
    B_pad = _round_up(B, tb)
    if B_pad != B:
        x = jnp.pad(x, ((0, B_pad - B), (0, 0)))

    # bf16 matmul operands: halves weight HBM/VMEM traffic, full-rate MXU.
    w1b = w1.astype(jnp.bfloat16)
    w2b = w2.astype(jnp.bfloat16)
    w3b = w3.astype(jnp.bfloat16)

    grid = (B_pad // tb,)

    flops = 2 * B_pad * (S * H + H * H + H * A_pad)
    bytes_accessed = (B_pad * S * 4 + B_pad * A_pad * 4
                      + w1b.size * 2 + w2b.size * 2 + w3b.size * 2
                      + b1.size * 4 + b2.size * 4 + b3.size * 4)
    cost = pl.CostEstimate(flops=flops,
                           transcendentals=B_pad * A_pad,
                           bytes_accessed=bytes_accessed)

    kernel = functools.partial(_actor_kernel, max_action=float(max_action))
    out = pl.pallas_call(
        kernel,
        out_shape=jax.ShapeDtypeStruct((B_pad, A_pad), jnp.float32),
        grid=grid,
        in_specs=[
            pl.BlockSpec((tb, S), lambda i: (i, 0)),        # x: streamed per tile
            pl.BlockSpec((S, H), lambda i: (0, 0)),         # w1: resident
            pl.BlockSpec((1, H), lambda i: (0, 0)),         # b1: resident
            pl.BlockSpec((H, H), lambda i: (0, 0)),         # w2: resident
            pl.BlockSpec((1, H), lambda i: (0, 0)),         # b2: resident
            pl.BlockSpec((H, A_pad), lambda i: (0, 0)),     # w3: resident
            pl.BlockSpec((1, A_pad), lambda i: (0, 0)),     # b3: resident
        ],
        out_specs=pl.BlockSpec((tb, A_pad), lambda i: (i, 0)),
        compiler_params=pltpu.CompilerParams(
            dimension_semantics=("parallel",),
            vmem_limit_bytes=64 * 1024 * 1024,
        ),
        cost_estimate=cost,
    )(x, w1b, b1, w2b, b2, w3b, b3)

    # Strip batch / act_dim padding.
    return out[:B, :A]


def init_actor_params(key, state_dim, act_dim, hidden_dim):
    """Deterministic init mimicking nn.Linear default (uniform +/- 1/sqrt(fan_in)).

    Weights are returned already transposed to (in, out); biases as (1, out)
    for clean lane-wise broadcasting inside the kernel.
    """
    keys = jax.random.split(key, 6)

    def linear(kw, kb, fan_in, fan_out):
        bound = 1.0 / jnp.sqrt(jnp.float32(fan_in))
        w = jax.random.uniform(kw, (fan_in, fan_out), jnp.float32, -bound, bound)
        b = jax.random.uniform(kb, (1, fan_out), jnp.float32, -bound, bound)
        return w, b

    w1, b1 = linear(keys[0], keys[1], state_dim, hidden_dim)
    w2, b2 = linear(keys[2], keys[3], hidden_dim, hidden_dim)
    w3, b3 = linear(keys[4], keys[5], hidden_dim, act_dim)
    return (w1, b1, w2, b2, w3, b3)


def actor_reference(x, params, max_action):
    w1, b1, w2, b2, w3, b3 = params
    h1 = jnp.maximum(x @ w1 + b1, 0.0)
    h2 = jnp.maximum(h1 @ w2 + b2, 0.0)
    return max_action * jnp.tanh(h2 @ w3 + b3)


if __name__ == "__main__":
    # Small shapes consistent with the module (hidden_dim=256 is the default).
    batch, state_dim, act_dim, hidden_dim = 64, 16, 8, 256
    max_action = 2.0

    key = jax.random.PRNGKey(0)
    k_x, k_p = jax.random.split(key)
    x = jax.random.normal(k_x, (batch, state_dim), jnp.float32)
    params = init_actor_params(k_p, state_dim, act_dim, hidden_dim)

    out = actor_forward(x, params, max_action)
    out = jax.block_until_ready(out)

    ref = actor_reference(x, params, max_action)
    assert out.shape == (batch, act_dim)
    # bf16 matmul operands with f32 accumulation -> looser tolerance vs f32 ref.
    assert jnp.allclose(out, ref, atol=3e-2, rtol=3e-2), "mismatch vs JAX reference"

    print("KERNEL_OK")
</pallas_src>

<mosaic_0001>
module attributes {stable_mosaic.version = 11 : i64} {
  func.func @_actor_kernel(%arg0: i32, %arg1: memref<64x16xf32, #tpu.memory_space<vmem>>, %arg2: memref<16x256xbf16, #tpu.memory_space<vmem>>, %arg3: memref<1x256xf32, #tpu.memory_space<vmem>>, %arg4: memref<256x256xbf16, #tpu.memory_space<vmem>>, %arg5: memref<1x256xf32, #tpu.memory_space<vmem>>, %arg6: memref<256x128xbf16, #tpu.memory_space<vmem>>, %arg7: memref<1x128xf32, #tpu.memory_space<vmem>>, %arg8: memref<64x128xf32, #tpu.memory_space<vmem>>) attributes {dimension_semantics = [#tpu.dimension_semantics<parallel>], iteration_bounds = array<i64: 1>, scalar_prefetch = 0 : i64, scratch_operands = 0 : i64, tpu.core_type = #tpu.core_type<tc>, window_params = [{transform_indices = @transform_0, window_bounds = array<i64: 64, 16>}, {pipeline_mode = #tpu.pipeline_mode<synchronous>, transform_indices = @transform_1, window_bounds = array<i64: 16, 256>}, {pipeline_mode = #tpu.pipeline_mode<synchronous>, transform_indices = @transform_2, window_bounds = array<i64: 1, 256>}, {pipeline_mode = #tpu.pipeline_mode<synchronous>, transform_indices = @transform_3, window_bounds = array<i64: 256, 256>}, {pipeline_mode = #tpu.pipeline_mode<synchronous>, transform_indices = @transform_4, window_bounds = array<i64: 1, 256>}, {pipeline_mode = #tpu.pipeline_mode<synchronous>, transform_indices = @transform_5, window_bounds = array<i64: 256, 128>}, {pipeline_mode = #tpu.pipeline_mode<synchronous>, transform_indices = @transform_6, window_bounds = array<i64: 1, 128>}, {transform_indices = @transform_7, window_bounds = array<i64: 64, 128>}]} {
    %c0 = arith.constant 0 : index
    %c0_0 = arith.constant 0 : index
    %0 = vector.load %arg1[%c0, %c0_0] : memref<64x16xf32, #tpu.memory_space<vmem>>, vector<64x16xf32>
    %1 = arith.truncf %0 : vector<64x16xf32> to vector<64x16xbf16>
    %c0_1 = arith.constant 0 : index
    %c0_2 = arith.constant 0 : index
    %2 = vector.load %arg2[%c0_1, %c0_2] : memref<16x256xbf16, #tpu.memory_space<vmem>>, vector<16x256xbf16>
    %cst = arith.constant dense<0.000000e+00> : vector<64x256xf32>
    %3 = tpu.matmul %1, %2, %cst {dimension_numbers = #tpu.dot_dimension_numbers<[1], [0], [0], [1], [0, 0, 1, 1], [], []>} : vector<64x16xbf16>, vector<16x256xbf16>, vector<64x256xf32> -> vector<64x256xf32>
    %c0_3 = arith.constant 0 : index
    %c0_4 = arith.constant 0 : index
    %4 = vector.load %arg3[%c0_3, %c0_4] : memref<1x256xf32, #tpu.memory_space<vmem>>, vector<1x256xf32>
    %5 = vector.broadcast %4 : vector<1x256xf32> to vector<64x256xf32>
    %6 = arith.addf %3, %5 : vector<64x256xf32>
    %cst_5 = arith.constant 0.000000e+00 : f32
    %7 = vector.broadcast %cst_5 : f32 to vector<64x256xf32>
    %8 = arith.maximumf %6, %7 : vector<64x256xf32>
    %9 = arith.truncf %8 : vector<64x256xf32> to vector<64x256xbf16>
    %c0_6 = arith.constant 0 : index
    %c0_7 = arith.constant 0 : index
    %10 = vector.load %arg4[%c0_6, %c0_7] : memref<256x256xbf16, #tpu.memory_space<vmem>>, vector<256x256xbf16>
    %cst_8 = arith.constant dense<0.000000e+00> : vector<64x256xf32>
    %11 = tpu.matmul %9, %10, %cst_8 {dimension_numbers = #tpu.dot_dimension_numbers<[1], [0], [0], [1], [0, 0, 1, 1], [], []>} : vector<64x256xbf16>, vector<256x256xbf16>, vector<64x256xf32> -> vector<64x256xf32>
    %c0_9 = arith.constant 0 : index
    %c0_10 = arith.constant 0 : index
    %12 = vector.load %arg5[%c0_9, %c0_10] : memref<1x256xf32, #tpu.memory_space<vmem>>, vector<1x256xf32>
    %13 = vector.broadcast %12 : vector<1x256xf32> to vector<64x256xf32>
    %14 = arith.addf %11, %13 : vector<64x256xf32>
    %cst_11 = arith.constant 0.000000e+00 : f32
    %15 = vector.broadcast %cst_11 : f32 to vector<64x256xf32>
    %16 = arith.maximumf %14, %15 : vector<64x256xf32>
    %17 = arith.truncf %16 : vector<64x256xf32> to vector<64x256xbf16>
    %c0_12 = arith.constant 0 : index
    %c0_13 = arith.constant 0 : index
    %18 = vector.load %arg6[%c0_12, %c0_13] : memref<256x128xbf16, #tpu.memory_space<vmem>>, vector<256x128xbf16>
    %cst_14 = arith.constant dense<0.000000e+00> : vector<64x128xf32>
    %19 = tpu.matmul %17, %18, %cst_14 {dimension_numbers = #tpu.dot_dimension_numbers<[1], [0], [0], [1], [0, 0, 1, 1], [], []>} : vector<64x256xbf16>, vector<256x128xbf16>, vector<64x128xf32> -> vector<64x128xf32>
    %c0_15 = arith.constant 0 : index
    %c0_16 = arith.constant 0 : index
    %20 = vector.load %arg7[%c0_15, %c0_16] : memref<1x128xf32, #tpu.memory_space<vmem>>, vector<1x128xf32>
    %21 = vector.broadcast %20 : vector<1x128xf32> to vector<64x128xf32>
    %22 = arith.addf %19, %21 : vector<64x128xf32>
    %23 = math.tanh %22 : vector<64x128xf32>
    %cst_17 = arith.constant 2.000000e+00 : f32
    %24 = vector.broadcast %cst_17 : f32 to vector<64x128xf32>
    %25 = arith.mulf %24, %23 : vector<64x128xf32>
    %c0_18 = arith.constant 0 : index
    %c0_19 = arith.constant 0 : index
    %26 = vector.load %arg8[%c0_18, %c0_19] : memref<64x128xf32, #tpu.memory_space<vmem>>, vector<64x128xf32>
    tpu.vector_store %arg8[%c0_18, %c0_19], %25 {strides = array<i32>} : memref<64x128xf32, #tpu.memory_space<vmem>>, vector<64x128xf32>,
    return
  }
  func.func @transform_0(%arg0: i32) -> (i32, i32) {
    %c0_i32 = arith.constant 0 : i32
    %c0_i32_0 = arith.constant 0 : i32
    return %arg0, %c0_i32 : i32, i32
  }
  func.func @transform_1(%arg0: i32) -> (i32, i32) {
    %c0_i32 = arith.constant 0 : i32
    %c0_i32_0 = arith.constant 0 : i32
    %c0_i32_1 = arith.constant 0 : i32
    return %c0_i32, %c0_i32_0 : i32, i32
  }
  func.func @transform_2(%arg0: i32) -> (i32, i32) {
    %c0_i32 = arith.constant 0 : i32
    %c0_i32_0 = arith.constant 0 : i32
    %c0_i32_1 = arith.constant 0 : i32
    return %c0_i32, %c0_i32_0 : i32, i32
  }
  func.func @transform_3(%arg0: i32) -> (i32, i32) {
    %c0_i32 = arith.constant 0 : i32
    %c0_i32_0 = arith.constant 0 : i32
    %c0_i32_1 = arith.constant 0 : i32
    return %c0_i32, %c0_i32_0 : i32, i32
  }
  func.func @transform_4(%arg0: i32) -> (i32, i32) {
    %c0_i32 = arith.constant 0 : i32
    %c0_i32_0 = arith.constant 0 : i32
    %c0_i32_1 = arith.constant 0 : i32
    return %c0_i32, %c0_i32_0 : i32, i32
  }
  func.func @transform_5(%arg0: i32) -> (i32, i32) {
    %c0_i32 = arith.constant 0 : i32
    %c0_i32_0 = arith.constant 0 : i32
    %c0_i32_1 = arith.constant 0 : i32
    return %c0_i32, %c0_i32_0 : i32, i32
  }
  func.func @transform_6(%arg0: i32) -> (i32, i32) {
    %c0_i32 = arith.constant 0 : i32
    %c0_i32_0 = arith.constant 0 : i32
    %c0_i32_1 = arith.constant 0 : i32
    return %c0_i32, %c0_i32_0 : i32, i32
  }
  func.func @transform_7(%arg0: i32) -> (i32, i32) {
    %c0_i32 = arith.constant 0 : i32
    %c0_i32_0 = arith.constant 0 : i32
    return %arg0, %c0_i32 : i32, i32
  }
}

</mosaic_0001>

<bundles_post_ra>
// kernel: tpu_custom_call.1
= control target key start
LH: loop header
LB: loop body
LE: loop exit
PB: predicated region body
PF: predicated region fallthrough
CT: control target
= control target key end

     0   :  { %12 = vsyncpa [#allocation3], 0  ;;  %s1115_s0 = inlined_call_operand.vmem [shape: f32[64,16], index: 0, kind: input, shape index: {}]   ;;  %s1116_s1 = inlined_call_operand.vmem [shape: bf16[16,256], index: 1, kind: input, shape index: {}]   ;;  %s1117_s2 = inlined_call_operand.vmem [shape: f32[1,256], index: 2, kind: input, shape index: {}]   ;;  %s1118_s3 = inlined_call_operand.hbm [shape: bf16[256,256], index: 3, kind: input, shape index: {}]   ;;  %s1119_s4 = inlined_call_operand.vmem [shape: f32[1,256], index: 4, kind: input, shape index: {}]   ;;  %s1120_s5 = inlined_call_operand.hbm [shape: bf16[256,128], index: 5, kind: input, shape index: {}]   ;;  %s1121_s6 = inlined_call_operand.vmem [shape: f32[1,128], index: 6, kind: input, shape index: {}]   ;;  %s1122_s7 = inlined_call_operand.hbm [shape: f32[64,128], index: 7, kind: output, shape index: {}]  }
   0x1   :  { %13 = vsyncpa [#allocation6], 0 }
   0x2   :  { %14 = vsyncpa [#allocation4], 0  ;;  %s997_s24 = smov [#allocation2]  }
   0x3   :  { %s26_s25 = sshll.u32 %s997_s24, 4  ;;  %s27_s25 = int_to_ptr.vmem [resolvable:$true] %s26_s25 }
   0x4   :  { %s939_s26 = scalar_lea.vmem %s27_s25, 4096  ;;  %p944_p1 = scmp.lt.s32.totalorder %s27_s25, %s27_s25 }
   0x5   :  { %p940_p0 = scmp.ne.s32.totalorder %s27_s25, %s939_s26  ;;  %p945_p2 = scmp.lt.s32.totalorder %s939_s26, %s939_s26 }
   0x7   :  { %p946_p3 = por %p945_p2, %p944_p1 }
   0x9   :  { %p947_p4 = pnand %p946_p3, %p940_p0 }
   0xb   :  { %950 = shalt.err (!%p947_p4)
}
   0xc   :  { %s998_s27 = smov 128   ;;  %s999_s28 = smov 8  }
   0xd   :  { %32 = dma.hbm_to_vmem [thread:$0]  %s1118_s3, 4096, %s27_s25, [#allocation3], %s998_s27, %s998_s27, %s999_s28  }
   0xe   :  { %s1000_s8 = smov [#allocation5]  }
   0xf   :  { %s40_s9 = sshll.u32 %s1000_s8, 4  ;;  %s41_s9 = int_to_ptr.vmem [resolvable:$true] %s40_s9 }
  0x10   :  { %s959_s10 = scalar_lea.vmem %s41_s9, 2048  ;;  %p964_p6 = scmp.lt.s32.totalorder %s41_s9, %s41_s9 }
  0x11   :  { %p960_p5 = scmp.ne.s32.totalorder %s41_s9, %s959_s10  ;;  %p965_p7 = scmp.lt.s32.totalorder %s959_s10, %s959_s10 }
  0x13   :  { %p966_p8 = por %p965_p7, %p964_p6 }
  0x15   :  { %p967_p9 = pnand %p966_p8, %p960_p5 }
  0x17   :  { %970 = shalt.err (!%p967_p9)
}
  0x18   :  { %s1001_s11 = smov 64   ;;  %s1002_s12 = smov 4  }
  0x19   :  { %46 = dma.hbm_to_vmem [thread:$0]  %s1120_s5, 2048, %s41_s9, [#allocation6], %s1001_s11, %s1001_s11, %s1002_s12  }
  0x1a   :  { %991 = dma.done.wait [#allocation3], 4096  }
  0x1b   :  { %992 = vsyncadd [#allocation3], 4294963200 }
  0x1c   :  { %993 = dma.done.wait [#allocation6], 2048  }
  0x1d   :  { %994 = vsyncadd [#allocation6], 4294965248  ;;  %v1003_v0 = vmov 0   ;;  %v848_v1 = vld [vmem:[%s1116_s1 + $0x4] ss:$8 sps:$4 sm:$0xff]   ;;  %vm92_vm0 = vcmask 130048   ;;  %v72_v57 = vlaneseq }
  0x1e   :  { %137 = vmatprep.mubr.bf16.mxu0 %v1003_v0  ;;  %v850_v2 = vld [vmem:[%s1116_s1] ss:$8 sps:$4 sm:$0xff]   ;;  %119 = vmatprep.subr.bf16.mxu0 %v848_v1  ;;  %v851_v6 = vld [vmem:[#allocation2 + $0x74] ss:$8 sps:$4 sm:$0xff]   ;;  %v853_v7 = vld [vmem:[#allocation2 + $0x70] ss:$8 sps:$4 sm:$0xff]  }
  0x1f   :  { %v56_v3 = vld [vmem:[%s1115_s0] sm:$0xff]  ;;  %v57_v4 = vld [vmem:[%s1115_s0 + $0x8] sm:$0xff]  ;;  %120 = vmatpush1.bf16.msra.mxu0 %v850_v2  ;;  %v58_v8 = vld [vmem:[%s1115_s0 + $0x10] sm:$0xff]  ;;  %406 = vmatprep.subr.bf16.mxu1 %v851_v6  ;;  %v1088_v58 = vshrl.u32 %v72_v57, 7 }
  0x20   :  { %v64_v5 = vpack.c.bf16 %v57_v4, %v56_v3  ;;  %v854_v9 = vld [vmem:[#allocation2 + $0x64] ss:$8 sps:$4 sm:$0xff]   ;;  %v59_v10 = vld [vmem:[%s1115_s0 + $0x18] sm:$0xff]  ;;  %407 = vmatpush1.bf16.msra.mxu1 %v853_v7  ;;  %v856_v11 = vld [vmem:[#allocation2 + $0x60] ss:$8 sps:$4 sm:$0xff]  }
  0x21   :  { %408 = vmatprep.subr.bf16.mxu1 %v854_v9  ;;  %v857_v12 = vld [vmem:[#allocation2 + $0x54] ss:$8 sps:$4 sm:$0xff]   ;;  %v65_v13 = vpack.c.bf16 %v59_v10, %v58_v8  ;;  %v859_v14 = vld [vmem:[#allocation2 + $0x50] ss:$8 sps:$4 sm:$0xff]   ;;  %v860_v15 = vld [vmem:[#allocation2 + $0x44] ss:$8 sps:$4 sm:$0xff]  }
  0x22   :  { %747 = vmatmul.mubr.msk.bf16.vlgmr.msra.gmra.mxu0 %vm92_vm0, %v64_v5  ;;  %v60_v16 = vld [vmem:[%s1115_s0 + $0x20] sm:$0xff]  ;;  %v61_v17 = vld [vmem:[%s1115_s0 + $0x28] sm:$0xff]  ;;  %v863_v19 = vld [vmem:[#allocation2 + $0x34] ss:$8 sps:$4 sm:$0xff]   ;;  %v78_v59 = vsub.s32 1, %v1088_v58  ;;  %v74_v60 = vsub.s32 0, %v1088_v58 }
  0x23   :  { %147 = vmatprep.mubr.bf16.mxu0 %v1003_v0  ;;  %v862_v18 = vld [vmem:[#allocation2 + $0x40] ss:$8 sps:$4 sm:$0xff]   ;;  %v66_v20 = vpack.c.bf16 %v61_v17, %v60_v16  ;;  %v865_v21 = vld [vmem:[#allocation2 + $0x30] ss:$8 sps:$4 sm:$0xff]   ;;  %v866_v22 = vld [vmem:[#allocation2 + $0x24] ss:$8 sps:$4 sm:$0xff]  }
  0x24   :  { %409 = vmatpush1.bf16.msra.mxu1 %v856_v11  ;;  %v62_v23 = vld [vmem:[%s1115_s0 + $0x30] sm:$0xff]  ;;  %v63_v24 = vld [vmem:[%s1115_s0 + $0x38] sm:$0xff]  ;;  %v868_v25 = vld [vmem:[#allocation2 + $0x20] ss:$8 sps:$4 sm:$0xff]  }
  0x25   :  { %410 = vmatprep.subr.bf16.mxu1 %v857_v12  ;;  %v869_v26 = vld [vmem:[#allocation2 + $0x14] ss:$8 sps:$4 sm:$0xff]   ;;  %v871_v27 = vld [vmem:[#allocation2 + $0x10] ss:$8 sps:$4 sm:$0xff]   ;;  %v67_v28 = vpack.c.bf16 %v63_v24, %v62_v23  ;;  %v872_v29 = vld [vmem:[#allocation2 + $0x4] ss:$8 sps:$4 sm:$0xff]  }
  0x26   :  { %v874_v30 = vld [vmem:[#allocation2] ss:$8 sps:$4 sm:$0xff]   ;;  %v875_v31 = vld [vmem:[#allocation2 + $0xf4] ss:$8 sps:$4 sm:$0xff]   ;;  %v877_v32 = vld [vmem:[#allocation2 + $0xf0] ss:$8 sps:$4 sm:$0xff]  }
  0x27   :  { %v878_v33 = vld [vmem:[#allocation2 + $0xe4] ss:$8 sps:$4 sm:$0xff]   ;;  %v880_v34 = vld [vmem:[#allocation2 + $0xe0] ss:$8 sps:$4 sm:$0xff]   ;;  %v881_v35 = vld [vmem:[#allocation2 + $0xd4] ss:$8 sps:$4 sm:$0xff]  }
  0x28   :  { %411 = vmatpush1.bf16.msra.mxu1 %v859_v14  ;;  %v883_v36 = vld [vmem:[#allocation2 + $0xd0] ss:$8 sps:$4 sm:$0xff]   ;;  %v884_v37 = vld [vmem:[#allocation2 + $0xc4] ss:$8 sps:$4 sm:$0xff]   ;;  %v886_v38 = vld [vmem:[#allocation2 + $0xc0] ss:$8 sps:$4 sm:$0xff]  }
  0x29   :  { %412 = vmatprep.subr.bf16.mxu1 %v860_v15  ;;  %v887_v39 = vld [vmem:[#allocation2 + $0xb4] ss:$8 sps:$4 sm:$0xff]   ;;  %v889_v40 = vld [vmem:[#allocation2 + $0xb0] ss:$8 sps:$4 sm:$0xff]   ;;  %v890_v41 = vld [vmem:[#allocation2 + $0xa4] ss:$8 sps:$4 sm:$0xff]  }
  0x2a   :  { %748 = vmatmul.mubr.msk.bf16.gmra.mxu0 %vm92_vm0, %v65_v13  ;;  %v892_v42 = vld [vmem:[#allocation2 + $0xa0] ss:$8 sps:$4 sm:$0xff]   ;;  %v893_v43 = vld [vmem:[#allocation2 + $0x94] ss:$8 sps:$4 sm:$0xff]   ;;  %v895_v44 = vld [vmem:[#allocation2 + $0x90] ss:$8 sps:$4 sm:$0xff]  }
  0x2b   :  { %157 = vmatprep.mubr.bf16.mxu0 %v1003_v0  ;;  %v896_v45 = vld [vmem:[#allocation2 + $0x84] ss:$8 sps:$4 sm:$0xff]   ;;  %v898_v46 = vld [vmem:[#allocation2 + $0x80] ss:$8 sps:$4 sm:$0xff]   ;;  %v899_v47 = vld [vmem:[#allocation5 + $0x78] sm:$0xff]  }
  0x2c   :  { %413 = vmatpush1.bf16.msra.mxu1 %v862_v18  ;;  %v900_v48 = vld [vmem:[#allocation5 + $0x38] sm:$0xff]   ;;  %v901_v49 = vld [vmem:[#allocation5 + $0x70] sm:$0xff]   ;;  %800 = vmatprep.subr.bf16.mxu0 %v899_v47  ;;  %v903_v51 = vld [vmem:[#allocation5 + $0x68] sm:$0xff]  }
  0x2d   :  { %414 = vmatprep.subr.bf16.mxu1 %v863_v19  ;;  %801 = vmatpush3.bf16.msra.mxu0 %v900_v48  ;;  %v902_v50 = vld [vmem:[#allocation5 + $0x30] sm:$0xff]   ;;  %v904_v52 = vld [vmem:[#allocation5 + $0x28] sm:$0xff]   ;;  %v905_v53 = vld [vmem:[#allocation5 + $0x60] sm:$0xff]  }
  0x2e   :  { %802 = vmatprep.subr.bf16.mxu0 %v901_v49  ;;  %v906_v54 = vld [vmem:[#allocation5 + $0x20] sm:$0xff]   ;;  %v907_v55 = vld [vmem:[#allocation5 + $0x58] sm:$0xff]   ;;  %v910_v57 = vld [vmem:[#allocation5 + $0x10] sm:$0xff]  }
  0x2f   :  { %v908_v56 = vld [vmem:[#allocation5 + $0x18] sm:$0xff]   ;;  %v70_v61 = vld [vmem:[%s1117_s2] sm:$0x3] }
  0x30   :  { %415 = vmatpush1.bf16.msra.mxu1 %v865_v21  ;;  %v79_v63 = vrot.slane %v70_v61, %v78_v59 }
  0x31   :  { %416 = vmatprep.subr.bf16.mxu1 %v866_v22  ;;  %803 = vmatpush3.bf16.msra.mxu0 %v902_v50 }
  0x32   :  { %749 = vmatmul.mubr.msk.bf16.gmra.mxu0 %vm92_vm0, %v66_v20  ;;  %804 = vmatprep.subr.bf16.mxu0 %v903_v51 }
  0x33   :  { %167 = vmatprep.mubr.bf16.mxu0 %v1003_v0  ;;  %v75_v0 = vrot.slane %v70_v61, %v74_v60  ;;  %v911_v61 = vld [vmem:[#allocation5 + $0x48] sm:$0xff]  }
  0x34   :  { %417 = vmatpush1.bf16.msra.mxu1 %v868_v25 }
  0x35   :  { %418 = vmatprep.subr.bf16.mxu1 %v869_v26  ;;  %805 = vmatpush3.bf16.msra.mxu0 %v904_v52 }
  0x36   :  { %806 = vmatprep.subr.bf16.mxu0 %v905_v53 }
  0x38   :  { %419 = vmatpush1.bf16.msra.mxu1 %v871_v27 }
  0x39   :  { %420 = vmatprep.subr.bf16.mxu1 %v872_v29  ;;  %807 = vmatpush3.bf16.msra.mxu0 %v906_v54 }
  0x3a   :  { %750 = vmatmul.mubr.msk.bf16.gmra.mxu0 %vm92_vm0, %v67_v28  ;;  %808 = vmatprep.subr.bf16.mxu0 %v907_v55 }
  0x3c   :  { %421 = vmatpush1.bf16.msra.mxu1 %v874_v30 }
  0x3d   :  { %422 = vmatprep.subr.bf16.mxu1 %v875_v31  ;;  %809 = vmatpush3.bf16.msra.mxu0 %v908_v56  ;;  %v909_v56 = vld [vmem:[#allocation5 + $0x50] sm:$0xff]  }
  0x3e   :  { %810 = vmatprep.subr.bf16.mxu0 %v909_v56 }
  0x40   :  { %423 = vmatpush2.bf16.msra.mxu1 %v877_v32 }
  0x41   :  { %424 = vmatprep.subr.bf16.mxu1 %v878_v33  ;;  %811 = vmatpush3.bf16.msra.mxu0 %v910_v57 }
  0x42   :  { %812 = vmatprep.subr.bf16.mxu0 %v911_v61  ;;  %v783_v61 = vld [vmem:[%s1121_s6] ss:$0 sm:$0xff]  ;;  %s1004_s6 = smov [#allocation7]  }
  0x43   :  { %s732_s14 = sshll.u32 %s1004_s6, 4  ;;  %s733_s14 = int_to_ptr.vmem [resolvable:$true] %s732_s14 }
  0x44   :  { %425 = vmatpush2.bf16.msra.mxu1 %v880_v34  ;;  %s971_s3 = scalar_lea.vmem %s733_s14, 1024  ;;  %p976_p11 = scmp.lt.s32.totalorder %s733_s14, %s733_s14 }
  0x45   :  { %426 = vmatprep.subr.bf16.mxu1 %v881_v35  ;;  %p972_p10 = scmp.ne.s32.totalorder %s733_s14, %s971_s3  ;;  %p977_p12 = scmp.lt.s32.totalorder %s971_s3, %s971_s3 }
  0x47   :  { %p978_p13 = por %p977_p12, %p976_p11 }
  0x48   :  { %427 = vmatpush2.bf16.msra.mxu1 %v883_v36 }
  0x49   :  { %428 = vmatprep.subr.bf16.mxu1 %v884_v37  ;;  %p979_p0 = pnand %p978_p13, %p972_p10 }
  0x4c   :  { %429 = vmatpush2.bf16.msra.mxu1 %v886_v38 }
  0x4d   :  { %430 = vmatprep.subr.bf16.mxu1 %v887_v39 }
  0x50   :  { %431 = vmatpush2.bf16.msra.mxu1 %v889_v40 }
  0x51   :  { %432 = vmatprep.subr.bf16.mxu1 %v890_v41 }
  0x54   :  { %433 = vmatpush2.bf16.msra.mxu1 %v892_v42 }
  0x55   :  { %434 = vmatprep.subr.bf16.mxu1 %v893_v43 }
  0x58   :  { %435 = vmatpush2.bf16.msra.mxu1 %v895_v44 }
  0x59   :  { %436 = vmatprep.subr.bf16.mxu1 %v896_v45 }
  0x5c   :  { %437 = vmatpush2.bf16.msra.mxu1 %v898_v46 }
  0xe2   :  { %v139_v62 = vpop.f32.mrf.mxu0 }
  0xe3   :  { %v140_v5 = vadd.f32 %v139_v62, %v75_v0  ;;  %v912_v62 = vld [vmem:[#allocation5 + $0x8] sm:$0xff]  }
  0xe4   :  { %v141_v1 = vpop.f32.mrf.mxu0  ;;  %813 = vmatpush3.bf16.msra.mxu0 %v912_v62 }
  0xe5   :  { %v142_v3 = vadd.f32 %v141_v1, %v79_v63  ;;  %v178_v12 = vmax.f32 %v140_v5, 0.0  ;;  %v914_v1 = vld [vmem:[#allocation5] sm:$0xff]  }
  0xe6   :  { %v143_v2 = vpop.f32.mrf.mxu0 }
  0xe7   :  { %v144_v4 = vadd.f32 %v143_v2, %v75_v0  ;;  %v179_v10 = vmax.f32 %v142_v3, 0.0 }
  0xe8   :  { %v145_v6 = vpop.f32.mrf.mxu0 }
  0xe9   :  { %v146_v7 = vadd.f32 %v145_v6, %v79_v63  ;;  %v180_v8 = vmax.f32 %v144_v4, 0.0 }
  0xea   :  { %v149_v9 = vpop.f32.mrf.mxu0 }
  0xeb   :  { %v181_v11 = vmax.f32 %v146_v7, 0.0  ;;  %v194_v15 = vpack.c.bf16 %v180_v8, %v178_v12  ;;  %v150_v19 = vadd.f32 %v149_v9, %v75_v0 }
  0xec   :  { %v151_v13 = vpop.f32.mrf.mxu0 }
  0xed   :  { %v195_v14 = vpack.c.bf16 %v181_v11, %v179_v10  ;;  %v152_v17 = vadd.f32 %v151_v13, %v79_v63  ;;  %v182_v26 = vmax.f32 %v150_v19, 0.0 }
  0xee   :  { %v153_v16 = vpop.f32.mrf.mxu0 }
  0xef   :  { %v154_v18 = vadd.f32 %v153_v16, %v75_v0  ;;  %438 = vmatprep.mubr.bf16.mxu1 %v195_v14  ;;  %v183_v24 = vmax.f32 %v152_v17, 0.0 }
  0xf0   :  { %v155_v20 = vpop.f32.mrf.mxu0  ;;  %439 = vmatmul.mubr.bf16.vlgmr.msra.gmra.mxu1 %v194_v15 }
  0xf1   :  { %v156_v21 = vadd.f32 %v155_v20, %v79_v63  ;;  %v184_v22 = vmax.f32 %v154_v18, 0.0 }
  0xf2   :  { %v159_v23 = vpop.f32.mrf.mxu0 }
  0xf3   :  { %v185_v25 = vmax.f32 %v156_v21, 0.0  ;;  %v196_v29 = vpack.c.bf16 %v184_v22, %v182_v26  ;;  %v160_v33 = vadd.f32 %v159_v23, %v75_v0 }
  0xf4   :  { %v161_v27 = vpop.f32.mrf.mxu0 }
  0xf5   :  { %v197_v28 = vpack.c.bf16 %v185_v25, %v183_v24  ;;  %v162_v31 = vadd.f32 %v161_v27, %v79_v63  ;;  %v186_v40 = vmax.f32 %v160_v33, 0.0 }
  0xf6   :  { %v163_v30 = vpop.f32.mrf.mxu0 }
  0xf7   :  { %v164_v32 = vadd.f32 %v163_v30, %v75_v0  ;;  %448 = vmatprep.mubr.bf16.mxu1 %v197_v28  ;;  %v187_v38 = vmax.f32 %v162_v31, 0.0 }
  0xf8   :  { %v165_v34 = vpop.f32.mrf.mxu0  ;;  %449 = vmatmul.mubr.bf16.gmra.mxu1 %v196_v29 }
  0xf9   :  { %v166_v35 = vadd.f32 %v165_v34, %v79_v63  ;;  %v188_v36 = vmax.f32 %v164_v32, 0.0 }
  0xfa   :  { %v169_v37 = vpop.f32.mrf.mxu0 }
  0xfb   :  { %v189_v39 = vmax.f32 %v166_v35, 0.0  ;;  %v198_v43 = vpack.c.bf16 %v188_v36, %v186_v40  ;;  %v170_v47 = vadd.f32 %v169_v37, %v75_v0 }
  0xfc   :  { %v171_v41 = vpop.f32.mrf.mxu0 }
  0xfd   :  { %v199_v42 = vpack.c.bf16 %v189_v39, %v187_v38  ;;  %v172_v45 = vadd.f32 %v171_v41, %v79_v63  ;;  %v190_v53 = vmax.f32 %v170_v47, 0.0 }
  0xfe   :  { %v173_v44 = vpop.f32.mrf.mxu0 }
  0xff   :  { %v174_v46 = vadd.f32 %v173_v44, %v75_v0  ;;  %458 = vmatprep.mubr.bf16.mxu1 %v199_v42  ;;  %v191_v51 = vmax.f32 %v172_v45, 0.0  ;;  %v913_v0 = vld [vmem:[#allocation5 + $0x40] sm:$0xff]  }
 0x100   :  { %v175_v48 = vpop.f32.mrf.mxu0  ;;  %459 = vmatmul.mubr.bf16.gmra.mxu1 %v198_v43  ;;  %814 = vmatprep.subr.bf16.mxu0 %v913_v0 }
 0x101   :  { %v176_v49 = vadd.f32 %v175_v48, %v79_v63  ;;  %v192_v50 = vmax.f32 %v174_v46, 0.0  ;;  %815 = vmatpush3.bf16.msra.mxu0 %v914_v1  ;;  %v234_v63 = vld [vmem:[%s1119_s4] sm:$0x3] }
 0x102   :  { %v243_v3 = vrot.slane %v234_v63, %v78_v59  ;;  %v239_v4 = vrot.slane %v234_v63, %v74_v60 }
 0x103   :  { %v193_v52 = vmax.f32 %v176_v49, 0.0  ;;  %v200_v55 = vpack.c.bf16 %v192_v50, %v190_v53 }
 0x105   :  { %v201_v54 = vpack.c.bf16 %v193_v52, %v191_v51 }
 0x107   :  { %468 = vmatprep.mubr.bf16.mxu1 %v201_v54 }
 0x108   :  { %469 = vmatmul.mubr.bf16.gmra.mxu1 %v200_v55 }
 0x1b0   :  { %v440_v2 = vpop.f32.mrf.mxu1 }
 0x1b1   :  { %v441_v9 = vadd.f32 %v440_v2, %v239_v4 }
 0x1b2   :  { %v442_v5 = vpop.f32.mrf.mxu1 }
 0x1b3   :  { %v443_v7 = vadd.f32 %v442_v5, %v243_v3  ;;  %v479_v16 = vmax.f32 %v441_v9, 0.0 }
 0x1b4   :  { %v444_v6 = vpop.f32.mrf.mxu1 }
 0x1b5   :  { %v445_v8 = vadd.f32 %v444_v6, %v239_v4  ;;  %v480_v14 = vmax.f32 %v443_v7, 0.0 }
 0x1b6   :  { %v446_v10 = vpop.f32.mrf.mxu1 }
 0x1b7   :  { %v447_v11 = vadd.f32 %v446_v10, %v243_v3  ;;  %v481_v12 = vmax.f32 %v445_v8, 0.0 }
 0x1b8   :  { %v450_v13 = vpop.f32.mrf.mxu1 }
 0x1b9   :  { %v482_v15 = vmax.f32 %v447_v11, 0.0  ;;  %v495_v19 = vpack.c.bf16 %v481_v12, %v479_v16  ;;  %v451_v58 = vadd.f32 %v450_v13, %v239_v4 }
 0x1ba   :  { %v452_v17 = vpop.f32.mrf.mxu1 }
 0x1bb   :  { %v496_v18 = vpack.c.bf16 %v482_v15, %v480_v14  ;;  %v453_v59 = vadd.f32 %v452_v17, %v243_v3  ;;  %v483_v27 = vmax.f32 %v451_v58, 0.0 }
 0x1bc   :  { %v454_v20 = vpop.f32.mrf.mxu1 }
 0x1bd   :  { %v455_v21 = vadd.f32 %v454_v20, %v239_v4  ;;  %670 = vmatprep.mubr.bf16.mxu0 %v496_v18  ;;  %v484_v25 = vmax.f32 %v453_v59, 0.0 }
 0x1be   :  { %v456_v60 = vpop.f32.mrf.mxu1  ;;  %671 = vmatmul.mubr.bf16.vlgmr.msra.gmra.mxu0 %v495_v19 }
 0x1bf   :  { %v457_v22 = vadd.f32 %v456_v60, %v243_v3  ;;  %v485_v23 = vmax.f32 %v455_v21, 0.0 }
 0x1c0   :  { %v460_v24 = vpop.f32.mrf.mxu1 }
 0x1c1   :  { %v486_v26 = vmax.f32 %v457_v22, 0.0  ;;  %v497_v30 = vpack.c.bf16 %v485_v23, %v483_v27  ;;  %v461_v34 = vadd.f32 %v460_v24, %v239_v4 }
 0x1c2   :  { %v462_v28 = vpop.f32.mrf.mxu1 }
 0x1c3   :  { %v498_v29 = vpack.c.bf16 %v486_v26, %v484_v25  ;;  %v463_v32 = vadd.f32 %v462_v28, %v243_v3  ;;  %v487_v41 = vmax.f32 %v461_v34, 0.0 }
 0x1c4   :  { %v464_v31 = vpop.f32.mrf.mxu1 }
 0x1c5   :  { %v465_v33 = vadd.f32 %v464_v31, %v239_v4  ;;  %678 = vmatprep.mubr.bf16.mxu0 %v498_v29  ;;  %v488_v39 = vmax.f32 %v463_v32, 0.0 }
 0x1c6   :  { %v466_v35 = vpop.f32.mrf.mxu1  ;;  %679 = vmatmul.mubr.bf16.gmra.mxu0 %v497_v30 }
 0x1c7   :  { %v467_v36 = vadd.f32 %v466_v35, %v243_v3  ;;  %v489_v37 = vmax.f32 %v465_v33, 0.0 }
 0x1c8   :  { %v470_v38 = vpop.f32.mrf.mxu1 }
 0x1c9   :  { %v490_v40 = vmax.f32 %v467_v36, 0.0  ;;  %v499_v44 = vpack.c.bf16 %v489_v37, %v487_v41  ;;  %v471_v48 = vadd.f32 %v470_v38, %v239_v4 }
 0x1ca   :  { %v472_v42 = vpop.f32.mrf.mxu1 }
 0x1cb   :  { %v500_v43 = vpack.c.bf16 %v490_v40, %v488_v39  ;;  %v473_v46 = vadd.f32 %v472_v42, %v243_v3  ;;  %v491_v54 = vmax.f32 %v471_v48, 0.0 }
 0x1cc   :  { %v474_v45 = vpop.f32.mrf.mxu1 }
 0x1cd   :  { %v475_v47 = vadd.f32 %v474_v45, %v239_v4  ;;  %686 = vmatprep.mubr.bf16.mxu0 %v500_v43  ;;  %v492_v52 = vmax.f32 %v473_v46, 0.0 }
 0x1ce   :  { %v476_v49 = vpop.f32.mrf.mxu1  ;;  %687 = vmatmul.mubr.bf16.gmra.mxu0 %v499_v44 }
 0x1cf   :  { %v477_v50 = vadd.f32 %v476_v49, %v243_v3  ;;  %v493_v51 = vmax.f32 %v475_v47, 0.0 }
 0x1d1   :  { %v494_v53 = vmax.f32 %v477_v50, 0.0  ;;  %v501_v56 = vpack.c.bf16 %v493_v51, %v491_v54 }
 0x1d3   :  { %v502_v55 = vpack.c.bf16 %v494_v53, %v492_v52 }
 0x1d5   :  { %694 = vmatprep.mubr.bf16.mxu0 %v502_v55 }
 0x1d6   :  { %695 = vmatmul.mubr.bf16.gmra.mxu0 %v501_v56 }
 0x27e   :  { %v816_v57 = vpop.f32.mrf.mxu0 }
 0x280   :  { %v817_v62 = vpop.f32.mrf.mxu0 }
 0x281   :  { %v818_v0 = vadd.f32 %v817_v62, %v816_v57 }
 0x282   :  { %v819_v1 = vpop.f32.mrf.mxu0 }
 0x283   :  { %v673_v63 = vadd.f32 %v818_v0, %v783_v61 }
 0x284   :  { %v820_v2 = vpop.f32.mrf.mxu0 }
 0x285   :  { %915 = vtanh.f32 %v673_v63  ;;  %v821_v3 = vadd.f32 %v820_v2, %v819_v1 }
 0x286   :  { %v822_v4 = vpop.f32.mrf.mxu0 }
 0x287   :  { %v676_v5 = vadd.f32 %v821_v3, %v783_v61 }
 0x288   :  { %v823_v6 = vpop.f32.mrf.mxu0 }
 0x289   :  { %917 = vtanh.f32 %v676_v5  ;;  %v824_v7 = vadd.f32 %v823_v6, %v822_v4 }
 0x28a   :  { %v825_v8 = vpop.f32.mrf.mxu0 }
 0x28b   :  { %v681_v9 = vadd.f32 %v824_v7, %v783_v61 }
 0x28c   :  { %v826_v10 = vpop.f32.mrf.mxu0 }
 0x28d   :  { %919 = vtanh.f32 %v681_v9  ;;  %v827_v11 = vadd.f32 %v826_v10, %v825_v8 }
 0x28e   :  { %v828_v12 = vpop.f32.mrf.mxu0 }
 0x28f   :  { %v684_v13 = vadd.f32 %v827_v11, %v783_v61 }
 0x290   :  { %v829_v14 = vpop.f32.mrf.mxu0 }
 0x291   :  { %921 = vtanh.f32 %v684_v13  ;;  %v830_v15 = vadd.f32 %v829_v14, %v828_v12 }
 0x292   :  { %v916_v16 = vpop.eup %915  ;;  %v831_v17 = vpop.f32.mrf.mxu0 }
 0x293   :  { %v711_v18 = vmul.f32 2.0, %v916_v16  ;;  %v689_v19 = vadd.f32 %v830_v15, %v783_v61 }
 0x294   :  { %v832_v20 = vpop.f32.mrf.mxu0 }
 0x295   :  { %719 = vst [vmem:[#allocation7] sm:$0xff] %v711_v18  ;;  %923 = vtanh.f32 %v689_v19  ;;  %v833_v59 = vadd.f32 %v832_v20, %v831_v17 }
 0x296   :  { %v918_v21 = vpop.eup %917  ;;  %v834_v58 = vpop.f32.mrf.mxu0 }
 0x297   :  { %v712_v60 = vmul.f32 2.0, %v918_v21  ;;  %v692_v22 = vadd.f32 %v833_v59, %v783_v61 }
 0x298   :  { %v835_v23 = vpop.f32.mrf.mxu0 }
 0x299   :  { %720 = vst [vmem:[#allocation7 + $0x8] sm:$0xff] %v712_v60  ;;  %925 = vtanh.f32 %v692_v22  ;;  %v836_v24 = vadd.f32 %v835_v23, %v834_v58 }
 0x29a   :  { %v920_v25 = vpop.eup %919  ;;  %v837_v26 = vpop.f32.mrf.mxu0 }
 0x29b   :  { %v713_v27 = vmul.f32 2.0, %v920_v25  ;;  %v697_v28 = vadd.f32 %v836_v24, %v783_v61 }
 0x29c   :  { %v838_v29 = vpop.f32.mrf.mxu0 }
 0x29d   :  { %721 = vst [vmem:[#allocation7 + $0x10] sm:$0xff] %v713_v27  ;;  %927 = vtanh.f32 %v697_v28  ;;  %v839_v30 = vadd.f32 %v838_v29, %v837_v26 }
 0x29e   :  { %v922_v31 = vpop.eup %921 }
 0x29f   :  { %v714_v32 = vmul.f32 2.0, %v922_v31  ;;  %v700_v33 = vadd.f32 %v839_v30, %v783_v61 }
 0x2a1   :  { %722 = vst [vmem:[#allocation7 + $0x18] sm:$0xff] %v714_v32  ;;  %929 = vtanh.f32 %v700_v33 }
 0x2a2   :  { %v924_v34 = vpop.eup %923 }
 0x2a3   :  { %v715_v35 = vmul.f32 2.0, %v924_v34 }
 0x2a5   :  { %723 = vst [vmem:[#allocation7 + $0x20] sm:$0xff] %v715_v35 }
 0x2a6   :  { %v926_v36 = vpop.eup %925 }
 0x2a7   :  { %v716_v37 = vmul.f32 2.0, %v926_v36 }
 0x2a9   :  { %724 = vst [vmem:[#allocation7 + $0x28] sm:$0xff] %v716_v37 }
 0x2aa   :  { %v928_v38 = vpop.eup %927 }
 0x2ab   :  { %v717_v39 = vmul.f32 2.0, %v928_v38 }
 0x2ad   :  { %725 = vst [vmem:[#allocation7 + $0x30] sm:$0xff] %v717_v39 }
 0x2ae   :  { %v930_v40 = vpop.eup %929 }
 0x2af   :  { %v718_v41 = vmul.f32 2.0, %v930_v40 }
 0x2b1   :  { %726 = vst [vmem:[#allocation7 + $0x38] sm:$0xff] %v718_v41 }
 0x2b2   :  { %982 = shalt.err (!%p979_p0)
}
 0x2b3   :  { %738 = dma.vmem_to_hbm [thread:$0]  %s733_s14, 1024, %s1122_s7, [#allocation4], %s998_s27, %s998_s27, %s999_s28  }
 0x2b4   :  { %995 = dma.done.wait [#allocation4], 1024  }
 0x2b5   :  { %996 = vsyncadd [#allocation4], 4294966272 }
 0x2b6   :  { %742 = vsyncpa [#allocation3], 1 }
 0x2b7   :  { %743 = vsyncpa [#allocation6], 1 }
 0x2b8   :  { %744 = vsyncpa [#allocation4], 1 }

</bundles_post_ra>
